<compile_context>
chip_gen: v5e
topology: v5e:2x2
jax: 0.10.0
libtpu: 0.0.40
codegen_flags: <defaults>
</compile_context>

<pallas_src>
import functools

import jax
import jax.numpy as jnp
from jax.experimental import pallas as pl
from jax.experimental.pallas import tpu as pltpu


def _round_up(n: int, m: int) -> int:
    return ((n + m - 1) // m) * m


def _chip_kind() -> str:
    """Best-effort TPU generation string (lowercased device_kind)."""
    try:
        return jax.devices()[0].device_kind.lower()
    except Exception:  # pragma: no cover - CPU fallback
        return ""


def _vmem_capacity_bytes(kind: str) -> int:
    try:
        return int(pltpu.get_tpu_info().vmem_capacity_bytes)
    except Exception:
        # v7x: 64 MiB / TC; v5e & v6e: 128 MiB.
        return (64 if "v7" in kind else 128) * 1024 * 1024


def plan_ffn(M, d_model, d_ff, *, x_dtype, out_dtype, mxu_dtype=jnp.bfloat16):
    """Chip-aware tile / VMEM plan.  Compute once per (shape, chip) and reuse."""
    kind = _chip_kind()
    vmem_cap = _vmem_capacity_bytes(kind)
    # ~20% headroom for Mosaic internal scratch / semaphores / DMA descriptors.
    vmem_limit = int(vmem_cap * 0.8)
    num_cores = 2 if "v7" in kind else 1  # v7x: 2 TensorCores per chip

    dm_pad = _round_up(d_model, 128)

    # Weight-stream arithmetic intensity == tm FLOPs/byte; pick tm above the
    # chip's roofline ridge (v6e ~650, v7x ~310, v5e ~240 FLOPs/byte).
    if "v7" in kind:
        tm_t = 512
        tf_t = 512 if dm_pad <= 2048 else 256  # keep footprint inside 64 MiB
    elif "v6" in kind:
        tm_t, tf_t = 1024, 512
    elif "v5" in kind:
        tm_t, tf_t = 512, 512
    else:  # unknown chip / CPU interpreter: conservative defaults
        tm_t, tf_t = 512, 512

    tf = min(tf_t, _round_up(d_ff, 128))
    # Round to 16 (sub-32-bit sublane pack) so bf16 tiles never hit masked paths.
    tm = min(tm_t, _round_up(M, 16))
    # On multi-TC chips keep grid[0] >= num_cores so no TensorCore idles.
    if num_cores > 1 and M > 16:
        per_core = _round_up((M + num_cores - 1) // num_cores, 16)
        tm = min(tm, max(per_core, 16))

    x_b = jnp.dtype(x_dtype).itemsize
    w_b = jnp.dtype(mxu_dtype).itemsize
    o_b = jnp.dtype(out_dtype).itemsize

    def _fits(tm_, tf_):
        foot = (2 * tm_ * dm_pad * x_b          # x tile, double-buffered
                + 2 * dm_pad * tf_ * w_b        # W1 block, double-buffered
                + 2 * tf_ * dm_pad * w_b        # W2 block, double-buffered
                + 2 * (tf_ + dm_pad) * 4        # bias blocks (f32)
                + 2 * tm_ * dm_pad * o_b        # output tile
                + tm_ * dm_pad * 4)             # f32 accumulator scratch
        return foot <= vmem_limit

    # Shrink until the working set fits the chip's VMEM budget.
    while not _fits(tm, tf) and (tm > 256 or tf > 256):
        if tm >= tf and tm > 256:
            tm = max(256, tm // 2)
        elif tf > 256:
            tf = max(256, tf // 2)
        else:
            break

    m_pad = _round_up(M, tm)
    ff_pad = _round_up(d_ff, tf)
    return dict(tm=tm, tf=tf, dm_pad=dm_pad, ff_pad=ff_pad, m_pad=m_pad,
                vmem_limit=vmem_limit)


def _maybe_pad(a, target_shape):
    """Zero-pad up to target_shape; no-op (no extra XLA pass) when aligned."""
    pads = tuple((0, t - s) for s, t in zip(a.shape, target_shape))
    if all(p == (0, 0) for p in pads):
        return a
    return jnp.pad(a, pads)


def prepare_ffn_weights(w1, b1, w2, b2, plan, *, mxu_dtype=jnp.bfloat16):
    """Pad + cast weights ONCE (hoist out of the per-call hot path and cache)."""
    dm_pad, ff_pad = plan["dm_pad"], plan["ff_pad"]
    w1p = _maybe_pad(w1.astype(mxu_dtype), (dm_pad, ff_pad))
    w2p = _maybe_pad(w2.astype(mxu_dtype), (ff_pad, dm_pad))
    b1p = _maybe_pad(b1.astype(jnp.float32), (ff_pad,)).reshape(1, ff_pad)
    b2p = _maybe_pad(b2.astype(jnp.float32), (dm_pad,)).reshape(1, dm_pad)
    return w1p, b1p, w2p, b2p


def _ffn_kernel(x_ref, w1_ref, b1_ref, w2_ref, b2_ref, o_ref, acc_ref, *,
                mxu_dtype):
    # x_ref:   (tm, dm_pad)   input row tile (original dtype, cast in-kernel)
    # w1_ref:  (dm_pad, tf)   W1 column block (mxu_dtype)
    # b1_ref:  (1, tf)        f32 bias-1 block
    # w2_ref:  (tf, dm_pad)   W2 row block (mxu_dtype)
    # b2_ref:  (1, dm_pad)    f32 bias-2
    # o_ref:   (tm, dm_pad)   output tile (resident across the d_ff grid axis)
    # acc_ref: (tm, dm_pad)   f32 VMEM accumulator scratch
    k = pl.program_id(1)

    @pl.when(k == 0)
    def _():
        acc_ref[...] = jnp.zeros_like(acc_ref)

    # Cast to the MXU dtype on the VPU (free filler under MXU work); this
    # avoids a separate un-hidden XLA cast pass over x in HBM.
    x = x_ref[...].astype(mxu_dtype)
    h = jnp.dot(x, w1_ref[...], preferred_element_type=jnp.float32)
    h = jnp.maximum(h + b1_ref[...], 0.0)
    # nn.Dropout == identity in eval mode.

    acc_ref[...] += jnp.dot(h.astype(w2_ref.dtype), w2_ref[...],
                            preferred_element_type=jnp.float32)

    @pl.when(k == pl.num_programs(1) - 1)
    def _():
        o_ref[...] = (acc_ref[...] + b2_ref[...]).astype(o_ref.dtype)


def feed_forward_block_prepared(x, w1p, b1p, w2p, b2p, plan, *,
                                mxu_dtype=jnp.bfloat16):
    """FFN forward with pre-padded / pre-cast weights and a precomputed plan."""
    B, S, d_model = x.shape
    M = B * S
    tm, tf = plan["tm"], plan["tf"]
    dm_pad, ff_pad, m_pad = plan["dm_pad"], plan["ff_pad"], plan["m_pad"]
    out_dtype = x.dtype

    # Activations stay in their input dtype; pad only when shape demands it
    # (zero padding keeps the valid region exact).
    x2d = _maybe_pad(x.reshape(M, d_model), (m_pad, dm_pad))

    grid = (m_pad // tm, ff_pad // tf)

    w_b = jnp.dtype(mxu_dtype).itemsize
    cost = pl.CostEstimate(
        flops=4 * m_pad * dm_pad * ff_pad,          # two matmuls
        transcendentals=0,
        bytes_accessed=(
            x2d.size * x2d.dtype.itemsize                         # x once
            + grid[0] * (w1p.size + w2p.size) * w_b               # weights re-streamed per row tile
            + grid[0] * (b1p.size + b2p.size) * 4                 # biases per row tile
            + m_pad * dm_pad * jnp.dtype(out_dtype).itemsize),    # output once
    )

    kernel = functools.partial(_ffn_kernel, mxu_dtype=mxu_dtype)

    out2d = pl.pallas_call(
        kernel,
        out_shape=jax.ShapeDtypeStruct((m_pad, dm_pad), out_dtype),
        grid_spec=pltpu.PrefetchScalarGridSpec(
            num_scalar_prefetch=0,
            grid=grid,
            in_specs=[
                pl.BlockSpec((tm, dm_pad), lambda i, k: (i, 0)),   # x row tile
                pl.BlockSpec((dm_pad, tf), lambda i, k: (0, k)),   # W1 block
                pl.BlockSpec((1, tf), lambda i, k: (0, k)),        # b1 block
                pl.BlockSpec((tf, dm_pad), lambda i, k: (k, 0)),   # W2 block
                pl.BlockSpec((1, dm_pad), lambda i, k: (0, 0)),    # b2
            ],
            out_specs=pl.BlockSpec((tm, dm_pad), lambda i, k: (i, 0)),
            scratch_shapes=[pltpu.VMEM((tm, dm_pad), jnp.float32)],
        ),
        compiler_params=pltpu.CompilerParams(
            dimension_semantics=("parallel", "arbitrary"),
            vmem_limit_bytes=plan["vmem_limit"],
        ),
        cost_estimate=cost,
    )(x2d, w1p, b1p, w2p, b2p)

    return out2d[:M, :d_model].reshape(B, S, d_model)


def feed_forward_block(x, w1, b1, w2, b2, *, mxu_dtype=jnp.bfloat16):
    """One-shot convenience wrapper.

    x: (batch, seq, d_model) -> (batch, seq, d_model)
    w1: (d_model, d_ff), b1: (d_ff,), w2: (d_ff, d_model), b2: (d_model,)
    (weights input-major: x @ W + b == PyTorch x @ W.T + b).

    In a real model, call plan_ffn / prepare_ffn_weights once at init and
    reuse feed_forward_block_prepared every step.
    """
    B, S, d_model = x.shape
    d_ff = w1.shape[1]
    plan = plan_ffn(B * S, d_model, d_ff, x_dtype=x.dtype, out_dtype=x.dtype,
                    mxu_dtype=mxu_dtype)
    w1p, b1p, w2p, b2p = prepare_ffn_weights(w1, b1, w2, b2, plan,
                                             mxu_dtype=mxu_dtype)
    return feed_forward_block_prepared(x, w1p, b1p, w2p, b2p, plan,
                                       mxu_dtype=mxu_dtype)


def _reference(x, w1, b1, w2, b2, mxu_dtype=jnp.bfloat16):
    # Matches kernel numerics: bf16 MXU inputs, f32 accumulation / bias / ReLU.
    h = jnp.dot(x.astype(mxu_dtype), w1.astype(mxu_dtype),
                preferred_element_type=jnp.float32) + b1
    h = jnp.maximum(h, 0.0)
    y = jnp.dot(h.astype(mxu_dtype), w2.astype(mxu_dtype),
                preferred_element_type=jnp.float32) + b2
    return y.astype(x.dtype)


if __name__ == "__main__":
    # Small, module-consistent shapes: (batch, seq, d_model) with hidden d_ff.
    batch, seq, d_model, d_ff = 2, 8, 32, 64
    dropout_p = 0.1  # identity in eval mode

    key = jax.random.PRNGKey(0)
    kx, kw1, kb1, kw2, kb2 = jax.random.split(key, 5)

    x = jax.random.normal(kx, (batch, seq, d_model), dtype=jnp.float32)
    # Deterministic "Linear-like" init (scaled uniform), shapes per nn.Linear.
    w1 = jax.random.uniform(kw1, (d_model, d_ff), jnp.float32, -1.0, 1.0) / jnp.sqrt(d_model)
    b1 = jax.random.uniform(kb1, (d_ff,), jnp.float32, -1.0, 1.0) / jnp.sqrt(d_model)
    w2 = jax.random.uniform(kw2, (d_ff, d_model), jnp.float32, -1.0, 1.0) / jnp.sqrt(d_ff)
    b2 = jax.random.uniform(kb2, (d_model,), jnp.float32, -1.0, 1.0) / jnp.sqrt(d_ff)

    # Hoisted weight preparation (done once, reused across calls).
    plan = plan_ffn(batch * seq, d_model, d_ff,
                    x_dtype=x.dtype, out_dtype=x.dtype)
    w1p, b1p, w2p, b2p = prepare_ffn_weights(w1, b1, w2, b2, plan)

    out = feed_forward_block_prepared(x, w1p, b1p, w2p, b2p, plan)
    out = jax.block_until_ready(out)

    ref = _reference(x, w1, b1, w2, b2)
    assert out.shape == (batch, seq, d_model)
    assert jnp.allclose(out, ref, atol=2e-2, rtol=2e-2), "mismatch vs reference"

    # One-shot convenience path must agree too.
    out2 = jax.block_until_ready(feed_forward_block(x, w1, b1, w2, b2))
    assert jnp.allclose(out2, ref, atol=2e-2, rtol=2e-2), "mismatch vs reference"

    print("KERNEL_OK")
</pallas_src>

<mosaic_0001>
module attributes {stable_mosaic.version = 11 : i64} {
  func.func @_ffn_kernel(%arg0: i32, %arg1: i32, %arg2: memref<16x128xf32, #tpu.memory_space<vmem>>, %arg3: memref<128x128xbf16, #tpu.memory_space<vmem>>, %arg4: memref<1x128xf32, #tpu.memory_space<vmem>>, %arg5: memref<128x128xbf16, #tpu.memory_space<vmem>>, %arg6: memref<1x128xf32, #tpu.memory_space<vmem>>, %arg7: memref<16x128xf32, #tpu.memory_space<vmem>>, %arg8: memref<16x128xf32, #tpu.memory_space<vmem>>) attributes {dimension_semantics = [#tpu.dimension_semantics<parallel>, #tpu.dimension_semantics<arbitrary>], iteration_bounds = array<i64: 1, 1>, scalar_prefetch = 0 : i64, scratch_operands = 1 : i64, tpu.core_type = #tpu.core_type<tc>, window_params = [{transform_indices = @transform_0, window_bounds = array<i64: 16, 128>}, {transform_indices = @transform_1, window_bounds = array<i64: 128, 128>}, {transform_indices = @transform_2, window_bounds = array<i64: 1, 128>}, {transform_indices = @transform_3, window_bounds = array<i64: 128, 128>}, {pipeline_mode = #tpu.pipeline_mode<synchronous>, transform_indices = @transform_4, window_bounds = array<i64: 1, 128>}, {transform_indices = @transform_5, window_bounds = array<i64: 16, 128>}]} {
    %c0_i32 = arith.constant 0 : i32
    %0 = arith.cmpi eq, %arg1, %c0_i32 : i32
    %1 = arith.extui %0 : i1 to i32
    %c0_i32_0 = arith.constant 0 : i32
    %2 = arith.cmpi ne, %1, %c0_i32_0 : i32
    scf.if %2 {
      %cst_16 = arith.constant 0.000000e+00 : f32
      %21 = vector.broadcast %cst_16 : f32 to vector<16x128xf32>
      %c0_17 = arith.constant 0 : index
      %c0_18 = arith.constant 0 : index
      %22 = vector.load %arg8[%c0_17, %c0_18] : memref<16x128xf32, #tpu.memory_space<vmem>>, vector<16x128xf32>
      tpu.vector_store %arg8[%c0_17, %c0_18], %21 {strides = array<i32>} : memref<16x128xf32, #tpu.memory_space<vmem>>, vector<16x128xf32>,
    } else {
    }
    %c0 = arith.constant 0 : index
    %c0_1 = arith.constant 0 : index
    %3 = vector.load %arg2[%c0, %c0_1] : memref<16x128xf32, #tpu.memory_space<vmem>>, vector<16x128xf32>
    %4 = arith.truncf %3 : vector<16x128xf32> to vector<16x128xbf16>
    %c0_2 = arith.constant 0 : index
    %c0_3 = arith.constant 0 : index
    %5 = vector.load %arg3[%c0_2, %c0_3] : memref<128x128xbf16, #tpu.memory_space<vmem>>, vector<128x128xbf16>
    %cst = arith.constant dense<0.000000e+00> : vector<16x128xf32>
    %6 = tpu.matmul %4, %5, %cst {dimension_numbers = #tpu.dot_dimension_numbers<[1], [0], [0], [1], [0, 0, 1, 1], [], []>} : vector<16x128xbf16>, vector<128x128xbf16>, vector<16x128xf32> -> vector<16x128xf32>
    %c0_4 = arith.constant 0 : index
    %c0_5 = arith.constant 0 : index
    %7 = vector.load %arg4[%c0_4, %c0_5] : memref<1x128xf32, #tpu.memory_space<vmem>>, vector<1x128xf32>
    %8 = vector.broadcast %7 : vector<1x128xf32> to vector<16x128xf32>
    %9 = arith.addf %6, %8 : vector<16x128xf32>
    %cst_6 = arith.constant 0.000000e+00 : f32
    %10 = vector.broadcast %cst_6 : f32 to vector<16x128xf32>
    %11 = arith.maximumf %9, %10 : vector<16x128xf32>
    %c0_7 = arith.constant 0 : index
    %c0_8 = arith.constant 0 : index
    %12 = vector.load %arg8[%c0_7, %c0_8] : memref<16x128xf32, #tpu.memory_space<vmem>>, vector<16x128xf32>
    %13 = arith.truncf %11 : vector<16x128xf32> to vector<16x128xbf16>
    %c0_9 = arith.constant 0 : index
    %c0_10 = arith.constant 0 : index
    %14 = vector.load %arg5[%c0_9, %c0_10] : memref<128x128xbf16, #tpu.memory_space<vmem>>, vector<128x128xbf16>
    %cst_11 = arith.constant dense<0.000000e+00> : vector<16x128xf32>
    %15 = tpu.matmul %13, %14, %cst_11 {dimension_numbers = #tpu.dot_dimension_numbers<[1], [0], [0], [1], [0, 0, 1, 1], [], []>} : vector<16x128xbf16>, vector<128x128xbf16>, vector<16x128xf32> -> vector<16x128xf32>
    %16 = arith.addf %12, %15 : vector<16x128xf32>
    %c0_12 = arith.constant 0 : index
    %c0_13 = arith.constant 0 : index
    %17 = vector.load %arg8[%c0_12, %c0_13] : memref<16x128xf32, #tpu.memory_space<vmem>>, vector<16x128xf32>
    tpu.vector_store %arg8[%c0_12, %c0_13], %16 {strides = array<i32>} : memref<16x128xf32, #tpu.memory_space<vmem>>, vector<16x128xf32>,
    %c0_i32_14 = arith.constant 0 : i32
    %18 = arith.cmpi eq, %arg1, %c0_i32_14 : i32
    %19 = arith.extui %18 : i1 to i32
    %c0_i32_15 = arith.constant 0 : i32
    %20 = arith.cmpi ne, %19, %c0_i32_15 : i32
    scf.if %20 {
      %c0_16 = arith.constant 0 : index
      %c0_17 = arith.constant 0 : index
      %21 = vector.load %arg8[%c0_16, %c0_17] : memref<16x128xf32, #tpu.memory_space<vmem>>, vector<16x128xf32>
      %c0_18 = arith.constant 0 : index
      %c0_19 = arith.constant 0 : index
      %22 = vector.load %arg6[%c0_18, %c0_19] : memref<1x128xf32, #tpu.memory_space<vmem>>, vector<1x128xf32>
      %23 = vector.broadcast %22 : vector<1x128xf32> to vector<16x128xf32>
      %24 = arith.addf %21, %23 : vector<16x128xf32>
      %c0_20 = arith.constant 0 : index
      %c0_21 = arith.constant 0 : index
      %25 = vector.load %arg7[%c0_20, %c0_21] : memref<16x128xf32, #tpu.memory_space<vmem>>, vector<16x128xf32>
      tpu.vector_store %arg7[%c0_20, %c0_21], %24 {strides = array<i32>} : memref<16x128xf32, #tpu.memory_space<vmem>>, vector<16x128xf32>,
    } else {
    }
    return
  }
  func.func @transform_0(%arg0: i32, %arg1: i32) -> (i32, i32) {
    %c0_i32 = arith.constant 0 : i32
    %c0_i32_0 = arith.constant 0 : i32
    return %arg0, %c0_i32 : i32, i32
  }
  func.func @transform_1(%arg0: i32, %arg1: i32) -> (i32, i32) {
    %c0_i32 = arith.constant 0 : i32
    %c0_i32_0 = arith.constant 0 : i32
    return %c0_i32, %arg1 : i32, i32
  }
  func.func @transform_2(%arg0: i32, %arg1: i32) -> (i32, i32) {
    %c0_i32 = arith.constant 0 : i32
    %c0_i32_0 = arith.constant 0 : i32
    return %c0_i32, %arg1 : i32, i32
  }
  func.func @transform_3(%arg0: i32, %arg1: i32) -> (i32, i32) {
    %c0_i32 = arith.constant 0 : i32
    %c0_i32_0 = arith.constant 0 : i32
    return %arg1, %c0_i32 : i32, i32
  }
  func.func @transform_4(%arg0: i32, %arg1: i32) -> (i32, i32) {
    %c0_i32 = arith.constant 0 : i32
    %c0_i32_0 = arith.constant 0 : i32
    %c0_i32_1 = arith.constant 0 : i32
    return %c0_i32, %c0_i32_0 : i32, i32
  }
  func.func @transform_5(%arg0: i32, %arg1: i32) -> (i32, i32) {
    %c0_i32 = arith.constant 0 : i32
    %c0_i32_0 = arith.constant 0 : i32
    return %arg0, %c0_i32 : i32, i32
  }
}

</mosaic_0001>

<bundles_post_ra>
// kernel: tpu_custom_call.1
= control target key start
LH: loop header
LB: loop body
LE: loop exit
PB: predicated region body
PF: predicated region fallthrough
CT: control target
= control target key end

     0   :  { %10 = vsyncpa [#allocation4], 0  ;;  %s533_s0 = inlined_call_operand.hbm [shape: f32[16,128], index: 0, kind: input, shape index: {}]   ;;  %s534_s1 = inlined_call_operand.hbm [shape: bf16[128,128], index: 1, kind: input, shape index: {}]   ;;  %s535_s2 = inlined_call_operand.vmem [shape: f32[1,128], index: 2, kind: input, shape index: {}]   ;;  %s536_s3 = inlined_call_operand.hbm [shape: bf16[128,128], index: 3, kind: input, shape index: {}]   ;;  %s537_s4 = inlined_call_operand.vmem [shape: f32[1,128], index: 4, kind: input, shape index: {}]   ;;  %s538_s5 = inlined_call_operand.hbm [shape: f32[16,128], index: 5, kind: output, shape index: {}]  }
   0x1   :  { %11 = vsyncpa [#allocation7], 0  ;;  %s30_s20 = sshll.u32 %s534_s1, 4  ;;  %s31_s20 = int_to_ptr.hbm [resolvable:$true] %s30_s20 }
   0x2   :  { %12 = vsyncpa [#allocation5], 0  ;;  %s471_s21 = smov [#allocation6]   ;;  %s17_s25 = sshll.u32 %s533_s0, 4  ;;  %s18_s25 = int_to_ptr.hbm [resolvable:$true] %s17_s25 }
   0x3   :  { %s32_s22 = sshll.u32 %s471_s21, 4  ;;  %s472_s26 = smov 64   ;;  %s33_s22 = int_to_ptr.vmem [resolvable:$true] %s32_s22 }
   0x4   :  { %s473_s27 = smov 4   ;;  %s474_s28 = smov [#allocation3]  }
   0x5   :  { %38 = dma.hbm_to_vmem [thread:$0]  %s31_s20, 1024, %s33_s22, [#allocation7], %s472_s26, %s472_s26, %s473_s27  }
   0x6   :  { %s19_s29 = sshll.u32 %s474_s28, 4  ;;  %s475_s30 = smov 128   ;;  %s20_s29 = int_to_ptr.vmem [resolvable:$true] %s19_s29 }
   0x7   :  { %s476_s6 = smov 8   ;;  %s45_s8 = sshll.u32 %s536_s3, 4  ;;  %s46_s8 = int_to_ptr.hbm [resolvable:$true] %s45_s8 }
   0x8   :  { %25 = dma.hbm_to_vmem [thread:$0]  %s18_s25, 256, %s20_s29, [#allocation4], %s475_s30, %s475_s30, %s476_s6  }
   0x9   :  { %s477_s9 = smov [#allocation8]  }
   0xa   :  { %s47_s0 = sshll.u32 %s477_s9, 4  ;;  %s48_s0 = int_to_ptr.vmem [resolvable:$true] %s47_s0 }
   0xb   :  { %53 = dma.hbm_to_vmem [thread:$0]  %s46_s8, 1024, %s48_s0, [#allocation7], %s472_s26, %s472_s26, %s473_s27  }
   0xc   :  { %465 = dma.done.wait [#allocation4], 256  }
   0xd   :  { %466 = vsyncadd [#allocation4], 4294967040 }
   0xe   :  { %467 = dma.done.wait [#allocation7], 2048  }
   0xf   :  { %468 = vsyncadd [#allocation7], 4294965248  ;;  %v350_v0 = vld [vmem:[#allocation6 + $0x38] sm:$0xff]  ;;  %v349_v1 = vld [vmem:[#allocation6 + $0x30] sm:$0xff]  ;;  %s478_s13 = smov [#allocation9]  }
  0x10   :  { %145 = vmatpush.bf16.msra.mxu0 %v350_v0  ;;  %v358_v2 = vld [vmem:[#allocation8 + $0x38] sm:$0xff]  ;;  %v357_v3 = vld [vmem:[#allocation8 + $0x30] sm:$0xff]  ;;  %v348_v4 = vld [vmem:[#allocation6 + $0x28] sm:$0xff]  ;;  %s263_s14 = sshll.u32 %s478_s13, 4  ;;  %s264_s14 = int_to_ptr.vmem [resolvable:$true] %s263_s14 }
  0x11   :  { %228 = vmatpush.bf16.msra.mxu1 %v358_v2  ;;  %v356_v5 = vld [vmem:[#allocation8 + $0x28] sm:$0xff]  ;;  %v347_v6 = vld [vmem:[#allocation6 + $0x20] sm:$0xff]  ;;  %v346_v8 = vld [vmem:[#allocation6 + $0x18] sm:$0xff] }
  0x12   :  { %v355_v7 = vld [vmem:[#allocation8 + $0x20] sm:$0xff]  ;;  %v345_v9 = vld [vmem:[#allocation6 + $0x10] sm:$0xff]  ;;  %v344_v10 = vld [vmem:[#allocation6 + $0x8] sm:$0xff] }
  0x13   :  { %v343_v11 = vld [vmem:[#allocation6] sm:$0xff]  ;;  %v74_v12 = vld [vmem:[#allocation3] sm:$0xff]  ;;  %v75_v13 = vld [vmem:[#allocation3 + $0x8] sm:$0xff] }
  0x14   :  { %146 = vmatpush.bf16.msra.mxu0 %v349_v1  ;;  %v76_v14 = vpack.c.bf16 %v75_v13, %v74_v12  ;;  %v354_v15 = vld [vmem:[#allocation8 + $0x18] sm:$0xff]  ;;  %v353_v16 = vld [vmem:[#allocation8 + $0x10] sm:$0xff]  ;;  %v352_v17 = vld [vmem:[#allocation8 + $0x8] sm:$0xff] }
  0x15   :  { %229 = vmatpush.bf16.msra.mxu1 %v357_v3  ;;  %v351_v18 = vld [vmem:[#allocation8] sm:$0xff]  ;;  %v367_v20 = vld [vmem:[%s535_s2] ss:$0 sm:$0xff]  ;;  %s265_s2 = sshll.u32 %s538_s5, 4  ;;  %s266_s2 = int_to_ptr.hbm [resolvable:$true] %s265_s2 }
  0x16   :  { %v368_v27 = vld [vmem:[%s537_s4] ss:$0 sm:$0xff] }
  0x18   :  { %147 = vmatpush.bf16.msra.mxu0 %v348_v4 }
  0x19   :  { %230 = vmatpush.bf16.msra.mxu1 %v356_v5 }
  0x1c   :  { %148 = vmatpush.bf16.msra.mxu0 %v347_v6 }
  0x1d   :  { %231 = vmatpush.bf16.msra.mxu1 %v355_v7 }
  0x20   :  { %149 = vmatpush.bf16.msra.mxu0 %v346_v8 }
  0x21   :  { %232 = vmatpush.bf16.msra.mxu1 %v354_v15 }
  0x24   :  { %150 = vmatpush.bf16.msra.mxu0 %v345_v9 }
  0x25   :  { %233 = vmatpush.bf16.msra.mxu1 %v353_v16 }
  0x28   :  { %151 = vmatpush.bf16.msra.mxu0 %v344_v10 }
  0x29   :  { %234 = vmatpush.bf16.msra.mxu1 %v352_v17 }
  0x2c   :  { %152 = vmatpush.bf16.msra.mxu0 %v343_v11 }
  0x2d   :  { %235 = vmatpush.bf16.msra.mxu1 %v351_v18 }
  0x2f   :  { %153 = vmatmul.bf16.vlgmr.msra.gmra.mxu0 %v76_v14 }
  0xac   :  { %v154_v19 = vpop.f32.mrf.mxu0 }
  0xad   :  { %v155_v21 = vadd.f32 %v367_v20, %v154_v19 }
  0xaf   :  { %v159_v24 = vmax.f32 %v155_v21, 0.0 }
  0xb4   :  { %v156_v22 = vpop.f32.mrf.mxu0 }
  0xb5   :  { %v157_v23 = vadd.f32 %v367_v20, %v156_v22 }
  0xb7   :  { %v160_v25 = vmax.f32 %v157_v23, 0.0 }
  0xb9   :  { %v163_v26 = vpack.c.bf16 %v160_v25, %v159_v24 }
  0xbb   :  { %236 = vmatmul.bf16.vlgmr.msra.gmra.mxu1 %v163_v26 }
 0x138   :  { %v237_v28 = vpop.f32.mrf.mxu1 }
 0x139   :  { %v255_v29 = vadd.f32 %v368_v27, %v237_v28 }
 0x13b   :  { %257 = vst [vmem:[#allocation9] sm:$0xff] %v255_v29 }
 0x140   :  { %v239_v30 = vpop.f32.mrf.mxu1 }
 0x141   :  { %v256_v31 = vadd.f32 %v368_v27, %v239_v30 }
 0x143   :  { %258 = vst [vmem:[#allocation9 + $0x8] sm:$0xff] %v256_v31 }
 0x144   :  { %271 = dma.vmem_to_hbm [thread:$0]  %s264_s14, 256, %s266_s2, [#allocation5], %s475_s30, %s475_s30, %s476_s6  }
 0x145   :  { %469 = dma.done.wait [#allocation5], 256  }
 0x146   :  { %470 = vsyncadd [#allocation5], 4294967040 }
 0x147   :  { %276 = vsyncpa [#allocation4], 1 }
 0x148   :  { %277 = vsyncpa [#allocation7], 1 }
 0x149   :  { %278 = vsyncpa [#allocation5], 1 }

</bundles_post_ra>
